<compile_context>
chip_gen: v6e
topology: v6e:2x2x1
jax: 0.10.0
libtpu: 0.0.40
codegen_flags: <defaults>
</compile_context>

<pallas_src>
import jax
import jax.numpy as jnp
from jax.experimental import pallas as pl
from jax.experimental.pallas import tpu as pltpu


def _alias_identity_kernel(x_hbm_ref, o_hbm_ref, flag_ref):
    # The output buffer is aliased to the input buffer (input_output_aliases),
    # so no data movement is required: the result already holds `x`.
    # A single scalar SMEM store keeps the kernel body non-empty for Mosaic;
    # it never touches HBM/VMEM.
    del x_hbm_ref, o_hbm_ref
    flag_ref[0] = jnp.int32(1)


def mvit_combined_cmf_forward(x):
    """JAX/Pallas equivalent of MViT_combined_cmf.forward: returns x unchanged.

    x: (B, C, H, W) array (NCHW, matching the PyTorch module's input layout).
    Any shape / dtype is accepted since the forward is the identity.
    """
    return pl.pallas_call(
        _alias_identity_kernel,
        out_shape=jax.ShapeDtypeStruct(x.shape, x.dtype),
        in_specs=[pl.BlockSpec(memory_space=pl.ANY)],   # raw HBM ref, no auto-DMA
        out_specs=pl.BlockSpec(memory_space=pl.ANY),    # raw HBM ref, no auto-DMA
        scratch_shapes=[pltpu.SMEM((1,), jnp.int32)],
        input_output_aliases={0: 0},                    # output IS the input buffer
    )(x)


if __name__ == "__main__":
    key = jax.random.PRNGKey(0)
    # Small NCHW input consistent with the module's 3-channel image input.
    x = jax.random.normal(key, (2, 3, 32, 32), dtype=jnp.float32)

    fwd = jax.jit(mvit_combined_cmf_forward)
    y = fwd(x)
    y = jax.block_until_ready(y)

    # Forward semantics: output must equal the input exactly (bit-exact).
    assert y.shape == x.shape and y.dtype == x.dtype
    assert bool(jnp.all(y == x))

    print("KERNEL_OK")
</pallas_src>

<mosaic_0001>
module attributes {stable_mosaic.version = 11 : i64} {
  func.func @_alias_identity_kernel(%arg0: memref<2x3x32x32xf32, #tpu.memory_space<any>>, %arg1: memref<2x3x32x32xf32, #tpu.memory_space<any>>, %arg2: memref<1xi32, #tpu.memory_space<smem>>) attributes {dimension_semantics = [], scalar_prefetch = 0 : i64, scratch_operands = 1 : i64, tpu.core_type = #tpu.core_type<tc>} {
    %c1_i32 = arith.constant 1 : i32
    %c0 = arith.constant 0 : index
    %0 = memref.load %arg2[%c0] : memref<1xi32, #tpu.memory_space<smem>>
    memref.store %c1_i32, %arg2[%c0] : memref<1xi32, #tpu.memory_space<smem>>
    return
  }
}

</mosaic_0001>

<bundles_post_ra>
// kernel: mvit_combined_cmf_forward.1
= control target key start
LH: loop header
LB: loop body
LE: loop exit
PB: predicated region body
PF: predicated region fallthrough
CT: control target
= control target key end

     0   :  { %s18_s0 = inlined_call_operand.hbm [shape: f32[2,3,32,32], index: 0, kind: input, shape index: {}, may-alias: {0,1}]   ;;  %s19_s1 = inlined_call_operand.hbm [shape: f32[2,3,32,32], index: 1, kind: output, shape index: {}, may-alias: {0,1}]  }

</bundles_post_ra>
